<compile_context>
chip_gen: v7x
topology: tpu7x:2x2x1
jax: 0.10.0
libtpu: 0.0.40
codegen_flags: <defaults>
</compile_context>

<pallas_src>
import functools

import jax
import jax.numpy as jnp
from jax.experimental import pallas as pl
from jax.experimental.pallas import tpu as pltpu

_NEG_BIG = -1e30  # finite stand-in for -inf (avoids inf - inf -> NaN)


def _supcon_tile_kernel(lab_row_ref, lab_col_ref, pcnt_ref, frow_ref, fcol_ref,
                        out_ref,
                        m_sc, l_sc, psum_sc,
                        *, inv_temp, loss_scale, n_real, tm, tk):
    # lab_row_ref : (tm, 1)  int32   labels of this row tile (padded rows = -1)
    # lab_col_ref : (1, tk)  int32   labels of this column tile
    # pcnt_ref    : (tm, 1)  f32     precomputed positives count per anchor row
    # frow_ref    : (tm, D)  bf16/f32 anchor features
    # fcol_ref    : (tk, D)  bf16/f32 contrast features
    # out_ref     : (tm, 1)  f32     per-anchor loss (written at last col step)
    # scratch     : (tm, 1)  f32     running max / exp-sum / positives-sum
    i = pl.program_id(0)
    j = pl.program_id(1)

    @pl.when(j == 0)
    def _init():
        m_sc[...] = jnp.full_like(m_sc, _NEG_BIG)
        l_sc[...] = jnp.zeros_like(l_sc)
        psum_sc[...] = jnp.zeros_like(psum_sc)

    # Similarity tile on the MXU, f32 accumulation; scale by 1/temperature.
    adc = jax.lax.dot_general(
        frow_ref[...], fcol_ref[...],
        (((1,), (1,)), ((), ())),
        preferred_element_type=jnp.float32) * inv_temp            # (tm, tk) f32

    # Same-label positives via broadcast compare of (tm,1) x (1,tk) labels.
    same_lab = lab_row_ref[...] == lab_col_ref[...]               # (tm, tk) bool

    row0 = i * tm
    col0 = j * tk
    # Scalar tile classification: does this tile touch the diagonal (self
    # exclusion needed) or padded columns (col >= N exclusion needed)?
    overlaps_diag = jnp.logical_and(row0 < col0 + tk, col0 < row0 + tm)
    has_pad_cols = col0 + tk > n_real
    needs_mask = jnp.logical_or(overlaps_diag, has_pad_cols)

    def _update(adc_m, pos):
        m_prev = m_sc[...]
        m_new = jnp.maximum(m_prev, jnp.max(adc_m, axis=1, keepdims=True))
        alpha = jnp.exp(m_prev - m_new)
        # Masked entries of adc_m hold -1e30.  With N >= 2 the first column
        # tile always contains at least one valid non-self column for every
        # row, so m_new is finite from j == 0 onward and exp underflows to
        # exactly 0 for masked entries -> no extra select needed.
        p = jnp.exp(adc_m - m_new)
        l_sc[...] = alpha * l_sc[...] + jnp.sum(p, axis=1, keepdims=True)
        m_sc[...] = m_new
        # Positives: running sum of scaled logits (max-shift cancels later).
        psum_sc[...] += jnp.sum(jnp.where(pos, adc, 0.0), axis=1, keepdims=True)

    @pl.when(needs_mask)
    def _boundary_tile():
        # Masks from (tm,1)/(1,tk) iota vectors; compares broadcast to (tm,tk).
        rows = row0 + jax.lax.broadcasted_iota(jnp.int32, (tm, 1), 0)
        cols = col0 + jax.lax.broadcasted_iota(jnp.int32, (1, tk), 1)
        lmask = jnp.logical_and(cols < n_real, rows != cols)      # logits mask
        _update(jnp.where(lmask, adc, _NEG_BIG),
                jnp.logical_and(lmask, same_lab))

    @pl.when(jnp.logical_not(needs_mask))
    def _interior_tile():
        # No self columns and no padded columns in this tile: raw logits.
        _update(adc, same_lab)

    @pl.when(j == pl.num_programs(1) - 1)
    def _finalize():
        lse = m_sc[...] + jnp.log(l_sc[...])                      # logsumexp row
        cnt = pcnt_ref[...]
        mean_log_prob_pos = (psum_sc[...] - cnt * lse) / cnt
        ridx = i * tm + jax.lax.broadcasted_iota(jnp.int32, (tm, 1), 0)
        out_ref[...] = jnp.where(ridx < n_real,
                                 loss_scale * mean_log_prob_pos, 0.0)


def _aligned_divisor_block(n, requested, align=128):
    """Largest multiple of `align` that divides `n` and is <= `requested`."""
    best = align
    cand = align
    while cand <= min(requested, n):
        if n % cand == 0:
            best = cand
        cand += align
    return best


def supcon_loss(features, labels=None, mask=None, *,
                temperature=0.07, contrast_mode='all', base_temperature=0.07,
                block_m=512, block_k=1024, mxu_dtype=jnp.bfloat16):
    """JAX/Pallas equivalent of SupConLoss.forward (contrast_mode='all')."""
    features = jnp.asarray(features)
    if features.ndim < 3:
        raise ValueError('`features` needs to be [bsz, n_views, ...]')
    if features.ndim > 3:
        features = features.reshape(features.shape[0], features.shape[1], -1)
    if contrast_mode != 'all':
        # TODO(synk): contrast_mode='one' (anchors = first view only) not wired up.
        raise NotImplementedError('Only contrast_mode="all" is implemented')
    if labels is not None and mask is not None:
        raise ValueError('Cannot define both `labels` and `mask`')
    if mask is not None:
        # TODO(synk): arbitrary (possibly asymmetric) [bsz,bsz] masks are not
        # expressible as per-sample labels; not wired into the tiled kernel.
        raise NotImplementedError('explicit `mask` argument not implemented')

    B, V, D = features.shape
    N = B * V
    if N < 2:
        raise ValueError('SupConLoss requires at least 2 total samples (B*V >= 2)')

    if labels is None:
        labels = jnp.arange(B, dtype=jnp.int32)          # SimCLR: mask = eye(B)
    labels = jnp.asarray(labels).reshape(-1).astype(jnp.int32)
    if labels.shape[0] != B:
        raise ValueError('Num of labels does not match num of features')

    # contrast_feature = cat(unbind(features, dim=1), dim=0) -> view-major [N, D]
    cf = features.swapaxes(0, 1).reshape(N, D)
    lab_full = jnp.tile(labels, V)                       # label of row v*B + b

    # Per-anchor positive counts, O(B^2) in the wrapper (not per tile):
    #   pos_cnt[row] = V * (#samples with same label) - 1 (exclude self).
    cnt_b = jnp.sum(labels[:, None] == labels[None, :], axis=1).astype(jnp.float32)
    pos_cnt_full = jnp.tile(cnt_b * V - 1.0, V)          # (N,)

    # Pad N only to a multiple of 128 (no lcm over-padding); snap block sizes
    # to 128-aligned divisors of n_pad.
    n_pad = 128 * pl.cdiv(N, 128)
    block_k = _aligned_divisor_block(n_pad, block_k)
    block_m = _aligned_divisor_block(n_pad, block_m)
    # Guarantee >= 2 row tiles so the "parallel" row axis can shard across both
    # TensorCores on v7x (n_pad//2 is a multiple of 64, always divides n_pad).
    if n_pad // block_m < 2:
        block_m = max(8, n_pad // 2)
    d_pad = 128 * pl.cdiv(D, 128)

    # Pad directly in the MXU dtype (no full-size f32 intermediate).
    feat = jnp.zeros((n_pad, d_pad), mxu_dtype).at[:N, :D].set(cf.astype(mxu_dtype))
    lab_pad = jnp.full((n_pad,), -1, jnp.int32).at[:N].set(lab_full)
    lab_row = lab_pad.reshape(n_pad, 1)
    lab_col = lab_pad.reshape(1, n_pad)
    pcnt = jnp.ones((n_pad,), jnp.float32).at[:N].set(pos_cnt_full).reshape(n_pad, 1)

    grid = (n_pad // block_m, n_pad // block_k)
    itemsize = jnp.dtype(mxu_dtype).itemsize

    # VMEM budget: double-buffered feature tiles + generous allowance for live
    # (tm,tk) f32 temporaries.  Floor at the 32 MiB default, cap well under the
    # smallest physical VMEM we target growing into (v6e 128 MiB; v7x is 64 MiB
    # physical - shrink block_k there if D is very large).
    vmem_est = (2 * (block_m + block_k) * d_pad * itemsize
                + 12 * block_m * block_k * 4
                + 64 * block_m * 4)
    vmem_limit = int(min(100 * 2**20, max(32 * 2**20, vmem_est)))

    cost = pl.CostEstimate(
        flops=2 * n_pad * n_pad * d_pad,
        transcendentals=n_pad * n_pad,
        bytes_accessed=(n_pad * d_pad * itemsize                       # frow once
                        + grid[0] * n_pad * d_pad * itemsize           # fcol per row tile
                        + 4 * n_pad * 4))

    kernel = functools.partial(
        _supcon_tile_kernel,
        inv_temp=float(1.0 / temperature),
        loss_scale=float(-(temperature / base_temperature)),
        n_real=N, tm=block_m, tk=block_k)

    grid_spec = pltpu.PrefetchScalarGridSpec(
        num_scalar_prefetch=0,
        grid=grid,
        in_specs=[
            pl.BlockSpec((block_m, 1), lambda i, j: (i, 0)),        # row labels
            pl.BlockSpec((1, block_k), lambda i, j: (0, j)),        # col labels
            pl.BlockSpec((block_m, 1), lambda i, j: (i, 0)),        # pos counts
            pl.BlockSpec((block_m, d_pad), lambda i, j: (i, 0)),    # row feats
            pl.BlockSpec((block_k, d_pad), lambda i, j: (j, 0)),    # col feats
        ],
        out_specs=pl.BlockSpec((block_m, 1), lambda i, j: (i, 0)),
        scratch_shapes=[pltpu.VMEM((block_m, 1), jnp.float32)] * 3,
    )

    per_anchor = pl.pallas_call(
        kernel,
        grid_spec=grid_spec,
        out_shape=jax.ShapeDtypeStruct((n_pad, 1), jnp.float32),
        compiler_params=pltpu.CompilerParams(
            dimension_semantics=("parallel", "arbitrary"),
            vmem_limit_bytes=vmem_limit),
        cost_estimate=cost,
    )(lab_row, lab_col, pcnt, feat, feat)

    # Padded rows contribute exactly 0; mean over the N real anchors.
    return jnp.sum(per_anchor) / N


def _supcon_loss_ref(features, labels=None,
                     temperature=0.07, base_temperature=0.07):
    """Pure-JAX f32 reference (mirrors the PyTorch module, contrast_mode='all')."""
    B, V, D = features.shape
    N = B * V
    if labels is None:
        base = jnp.eye(B, dtype=jnp.float32)
    else:
        labels = labels.reshape(-1, 1)
        base = (labels == labels.T).astype(jnp.float32)
    cf = jnp.concatenate([features[:, v, :] for v in range(V)],
                         axis=0).astype(jnp.float32)
    adc = jnp.matmul(cf, cf.T, precision=jax.lax.Precision.HIGHEST) / temperature
    logits = adc - jnp.max(adc, axis=1, keepdims=True)
    pos = jnp.tile(base, (V, V))
    lmask = 1.0 - jnp.eye(N, dtype=jnp.float32)
    pos = pos * lmask
    exp_logits = jnp.exp(logits) * lmask
    log_prob = logits - jnp.log(exp_logits.sum(1, keepdims=True))
    mlpp = (pos * log_prob).sum(1) / pos.sum(1)
    loss = -(temperature / base_temperature) * mlpp
    return loss.reshape(V, B).mean()


if __name__ == "__main__":
    key = jax.random.PRNGKey(0)

    # --- Small test: batch=4, n_views=2, hidden=32 (N = 8) ---
    B, V, D = 4, 2, 32
    kf, kl = jax.random.split(key)
    features = jax.random.normal(kf, (B, V, D), dtype=jnp.float32)
    features = features / jnp.linalg.norm(features, axis=-1, keepdims=True)
    labels = jnp.array([0, 1, 0, 1], dtype=jnp.int32)

    ref = _supcon_loss_ref(features, labels)

    # f32 MXU path: tight agreement with the f32 reference.
    loss_f32 = jax.block_until_ready(
        supcon_loss(features, labels=labels, mxu_dtype=jnp.float32))
    assert jnp.allclose(loss_f32, ref, atol=1e-3, rtol=1e-3), (loss_f32, ref)

    # Default bf16-MXU path (fast on v6e/v7x): bf16-input tolerance.
    loss_bf16 = jax.block_until_ready(supcon_loss(features, labels=labels))
    assert jnp.allclose(loss_bf16, ref, atol=5e-2, rtol=5e-2), (loss_bf16, ref)

    # SimCLR (labels=None, mask=None) path.
    loss_simclr = jax.block_until_ready(
        supcon_loss(features, mxu_dtype=jnp.float32))
    ref_simclr = _supcon_loss_ref(features, None)
    assert jnp.allclose(loss_simclr, ref_simclr, atol=1e-3, rtol=1e-3), (
        loss_simclr, ref_simclr)

    # --- Medium test exercising the interior (unmasked) fast-path tiles ---
    B2, V2, D2 = 128, 2, 32                     # N = 256, grid (2,2) with 128x128 tiles
    kf2, kl2 = jax.random.split(kl)
    feats2 = jax.random.normal(kf2, (B2, V2, D2), dtype=jnp.float32)
    feats2 = feats2 / jnp.linalg.norm(feats2, axis=-1, keepdims=True)
    labels2 = jax.random.randint(kl2, (B2,), 0, 10, dtype=jnp.int32)
    ref2 = _supcon_loss_ref(feats2, labels2)
    loss2 = jax.block_until_ready(
        supcon_loss(feats2, labels=labels2, mxu_dtype=jnp.float32,
                    block_m=128, block_k=128))
    assert jnp.allclose(loss2, ref2, atol=5e-3, rtol=5e-3), (loss2, ref2)

    print("KERNEL_OK")
</pallas_src>

<mosaic_0001>
module attributes {stable_mosaic.version = 11 : i64} {
  func.func @_supcon_tile_kernel(%arg0: i32, %arg1: i32, %arg2: memref<64x1xi32, #tpu.memory_space<vmem>>, %arg3: memref<1x128xi32, #tpu.memory_space<vmem>>, %arg4: memref<64x1xf32, #tpu.memory_space<vmem>>, %arg5: memref<64x128xf32, #tpu.memory_space<vmem>>, %arg6: memref<128x128xf32, #tpu.memory_space<vmem>>, %arg7: memref<64x1xf32, #tpu.memory_space<vmem>>, %arg8: memref<64x1xf32, #tpu.memory_space<vmem>>, %arg9: memref<64x1xf32, #tpu.memory_space<vmem>>, %arg10: memref<64x1xf32, #tpu.memory_space<vmem>>) attributes {dimension_semantics = [#tpu.dimension_semantics<parallel>, #tpu.dimension_semantics<arbitrary>], iteration_bounds = array<i64: 2, 1>, scalar_prefetch = 0 : i64, scratch_operands = 3 : i64, tpu.core_type = #tpu.core_type<tc>, window_params = [{transform_indices = @transform_0, window_bounds = array<i64: 64, 1>}, {transform_indices = @transform_1, window_bounds = array<i64: 1, 128>}, {transform_indices = @transform_2, window_bounds = array<i64: 64, 1>}, {transform_indices = @transform_3, window_bounds = array<i64: 64, 128>}, {transform_indices = @transform_4, window_bounds = array<i64: 128, 128>}, {transform_indices = @transform_5, window_bounds = array<i64: 64, 1>}]} {
    %c0_i32 = arith.constant 0 : i32
    %0 = arith.cmpi eq, %arg1, %c0_i32 : i32
    %1 = arith.extui %0 : i1 to i32
    %c0_i32_0 = arith.constant 0 : i32
    %2 = arith.cmpi ne, %1, %c0_i32_0 : i32
    scf.if %2 {
      %cst_16 = arith.constant -1.000000e+30 : f32
      %31 = vector.broadcast %cst_16 : f32 to vector<64x1xf32>
      %c0_17 = arith.constant 0 : index
      %c0_18 = arith.constant 0 : index
      %32 = vector.load %arg8[%c0_17, %c0_18] : memref<64x1xf32, #tpu.memory_space<vmem>>, vector<64x1xf32>
      tpu.vector_store %arg8[%c0_17, %c0_18], %31 {strides = array<i32>} : memref<64x1xf32, #tpu.memory_space<vmem>>, vector<64x1xf32>,
      %cst_19 = arith.constant 0.000000e+00 : f32
      %33 = vector.broadcast %cst_19 : f32 to vector<64x1xf32>
      %c0_20 = arith.constant 0 : index
      %c0_21 = arith.constant 0 : index
      %34 = vector.load %arg9[%c0_20, %c0_21] : memref<64x1xf32, #tpu.memory_space<vmem>>, vector<64x1xf32>
      tpu.vector_store %arg9[%c0_20, %c0_21], %33 {strides = array<i32>} : memref<64x1xf32, #tpu.memory_space<vmem>>, vector<64x1xf32>,
      %cst_22 = arith.constant 0.000000e+00 : f32
      %35 = vector.broadcast %cst_22 : f32 to vector<64x1xf32>
      %c0_23 = arith.constant 0 : index
      %c0_24 = arith.constant 0 : index
      %36 = vector.load %arg10[%c0_23, %c0_24] : memref<64x1xf32, #tpu.memory_space<vmem>>, vector<64x1xf32>
      tpu.vector_store %arg10[%c0_23, %c0_24], %35 {strides = array<i32>} : memref<64x1xf32, #tpu.memory_space<vmem>>, vector<64x1xf32>,
    } else {
    }
    %c0 = arith.constant 0 : index
    %c0_1 = arith.constant 0 : index
    %3 = vector.load %arg5[%c0, %c0_1] : memref<64x128xf32, #tpu.memory_space<vmem>>, vector<64x128xf32>
    %c0_2 = arith.constant 0 : index
    %c0_3 = arith.constant 0 : index
    %4 = vector.load %arg6[%c0_2, %c0_3] : memref<128x128xf32, #tpu.memory_space<vmem>>, vector<128x128xf32>
    %cst = arith.constant dense<0.000000e+00> : vector<64x128xf32>
    %5 = tpu.matmul %3, %4, %cst {dimension_numbers = #tpu.dot_dimension_numbers<[1], [1], [0], [0], [0, 0, 1, 0], [], []>} : vector<64x128xf32>, vector<128x128xf32>, vector<64x128xf32> -> vector<64x128xf32>
    %cst_4 = arith.constant 14.2857141 : f32
    %6 = vector.broadcast %cst_4 : f32 to vector<64x128xf32>
    %7 = arith.mulf %5, %6 : vector<64x128xf32>
    %c0_5 = arith.constant 0 : index
    %c0_6 = arith.constant 0 : index
    %8 = vector.load %arg2[%c0_5, %c0_6] : memref<64x1xi32, #tpu.memory_space<vmem>>, vector<64x1xi32>
    %c0_7 = arith.constant 0 : index
    %c0_8 = arith.constant 0 : index
    %9 = vector.load %arg3[%c0_7, %c0_8] : memref<1x128xi32, #tpu.memory_space<vmem>>, vector<1x128xi32>
    %10 = vector.broadcast %8 : vector<64x1xi32> to vector<64x128xi32>
    %11 = vector.broadcast %9 : vector<1x128xi32> to vector<64x128xi32>
    %12 = arith.cmpi eq, %10, %11 : vector<64x128xi32>
    %c64_i32 = arith.constant 64 : i32
    %13 = arith.muli %arg0, %c64_i32 : i32
    %c128_i32 = arith.constant 128 : i32
    %14 = arith.muli %arg1, %c128_i32 : i32
    %c128_i32_9 = arith.constant 128 : i32
    %15 = arith.addi %14, %c128_i32_9 : i32
    %16 = arith.cmpi slt, %13, %15 : i32
    %c64_i32_10 = arith.constant 64 : i32
    %17 = arith.addi %13, %c64_i32_10 : i32
    %18 = arith.cmpi slt, %14, %17 : i32
    %19 = arith.andi %16, %18 : i1
    %c128_i32_11 = arith.constant 128 : i32
    %20 = arith.addi %14, %c128_i32_11 : i32
    %c8_i32 = arith.constant 8 : i32
    %21 = arith.cmpi sgt, %20, %c8_i32 : i32
    %22 = arith.ori %19, %21 : i1
    %23 = arith.extui %22 : i1 to i32
    %c0_i32_12 = arith.constant 0 : i32
    %24 = arith.cmpi ne, %23, %c0_i32_12 : i32
    scf.if %24 {
      %31 = tpu.iota {dimensions = array<i32: 0>} : vector<64x1xi32>
      %32 = vector.broadcast %13 : i32 to vector<64x1xi32>
      %33 = arith.addi %32, %31 : vector<64x1xi32>
      %34 = tpu.iota {dimensions = array<i32: 1>} : vector<1x128xi32>
      %35 = vector.broadcast %14 : i32 to vector<1x128xi32>
      %36 = arith.addi %35, %34 : vector<1x128xi32>
      %c8_i32_16 = arith.constant 8 : i32
      %37 = vector.broadcast %c8_i32_16 : i32 to vector<1x128xi32>
      %38 = arith.cmpi slt, %36, %37 : vector<1x128xi32>
      %39 = vector.broadcast %33 : vector<64x1xi32> to vector<64x128xi32>
      %40 = vector.broadcast %36 : vector<1x128xi32> to vector<64x128xi32>
      %41 = arith.cmpi ne, %39, %40 : vector<64x128xi32>
      %42 = vector.broadcast %38 : vector<1x128xi1> to vector<64x128xi1>
      %43 = arith.andi %42, %41 : vector<64x128xi1>
      %cst_17 = arith.constant -1.000000e+30 : f32
      %44 = vector.broadcast %cst_17 : f32 to vector<64x128xf32>
      %45 = arith.select %43, %7, %44 : vector<64x128xi1>, vector<64x128xf32>
      %46 = arith.andi %43, %12 : vector<64x128xi1>
      %c0_18 = arith.constant 0 : index
      %c0_19 = arith.constant 0 : index
      %47 = vector.load %arg8[%c0_18, %c0_19] : memref<64x1xf32, #tpu.memory_space<vmem>>, vector<64x1xf32>
      %cst_20 = arith.constant dense<0xFF800000> : vector<64xf32>
      %48 = vector.multi_reduction <maximumf>, %45, %cst_20 [1] : vector<64x128xf32> to vector<64xf32>
      %49 = vector.shape_cast %48 : vector<64xf32> to vector<64x1xf32>
      %50 = arith.maximumf %47, %49 : vector<64x1xf32>
      %51 = arith.subf %47, %50 : vector<64x1xf32>
      %52 = math.exp %51 : vector<64x1xf32>
      %53 = vector.broadcast %50 : vector<64x1xf32> to vector<64x128xf32>
      %54 = arith.subf %45, %53 : vector<64x128xf32>
      %55 = math.exp %54 : vector<64x128xf32>
      %c0_21 = arith.constant 0 : index
      %c0_22 = arith.constant 0 : index
      %56 = vector.load %arg9[%c0_21, %c0_22] : memref<64x1xf32, #tpu.memory_space<vmem>>, vector<64x1xf32>
      %57 = arith.mulf %52, %56 : vector<64x1xf32>
      %cst_23 = arith.constant dense<0.000000e+00> : vector<64xf32>
      %58 = vector.multi_reduction <add>, %55, %cst_23 [1] : vector<64x128xf32> to vector<64xf32>
      %59 = vector.shape_cast %58 : vector<64xf32> to vector<64x1xf32>
      %60 = arith.addf %57, %59 : vector<64x1xf32>
      %c0_24 = arith.constant 0 : index
      %c0_25 = arith.constant 0 : index
      %61 = vector.load %arg9[%c0_24, %c0_25] : memref<64x1xf32, #tpu.memory_space<vmem>>, vector<64x1xf32>
      tpu.vector_store %arg9[%c0_24, %c0_25], %60 {strides = array<i32>} : memref<64x1xf32, #tpu.memory_space<vmem>>, vector<64x1xf32>,
      %c0_26 = arith.constant 0 : index
      %c0_27 = arith.constant 0 : index
      %62 = vector.load %arg8[%c0_26, %c0_27] : memref<64x1xf32, #tpu.memory_space<vmem>>, vector<64x1xf32>
      tpu.vector_store %arg8[%c0_26, %c0_27], %50 {strides = array<i32>} : memref<64x1xf32, #tpu.memory_space<vmem>>, vector<64x1xf32>,
      %c0_28 = arith.constant 0 : index
      %c0_29 = arith.constant 0 : index
      %63 = vector.load %arg10[%c0_28, %c0_29] : memref<64x1xf32, #tpu.memory_space<vmem>>, vector<64x1xf32>
      %cst_30 = arith.constant 0.000000e+00 : f32
      %64 = vector.broadcast %cst_30 : f32 to vector<64x128xf32>
      %65 = arith.select %46, %7, %64 : vector<64x128xi1>, vector<64x128xf32>
      %cst_31 = arith.constant dense<0.000000e+00> : vector<64xf32>
      %66 = vector.multi_reduction <add>, %65, %cst_31 [1] : vector<64x128xf32> to vector<64xf32>
      %67 = vector.shape_cast %66 : vector<64xf32> to vector<64x1xf32>
      %68 = arith.addf %63, %67 : vector<64x1xf32>
      %c0_32 = arith.constant 0 : index
      %c0_33 = arith.constant 0 : index
      %69 = vector.load %arg10[%c0_32, %c0_33] : memref<64x1xf32, #tpu.memory_space<vmem>>, vector<64x1xf32>
      tpu.vector_store %arg10[%c0_32, %c0_33], %68 {strides = array<i32>} : memref<64x1xf32, #tpu.memory_space<vmem>>, vector<64x1xf32>,
    } else {
    }
    %true = arith.constant true
    %25 = arith.xori %22, %true : i1
    %26 = arith.extui %25 : i1 to i32
    %c0_i32_13 = arith.constant 0 : i32
    %27 = arith.cmpi ne, %26, %c0_i32_13 : i32
    scf.if %27 {
      %c0_16 = arith.constant 0 : index
      %c0_17 = arith.constant 0 : index
      %31 = vector.load %arg8[%c0_16, %c0_17] : memref<64x1xf32, #tpu.memory_space<vmem>>, vector<64x1xf32>
      %cst_18 = arith.constant dense<0xFF800000> : vector<64xf32>
      %32 = vector.multi_reduction <maximumf>, %7, %cst_18 [1] : vector<64x128xf32> to vector<64xf32>
      %33 = vector.shape_cast %32 : vector<64xf32> to vector<64x1xf32>
      %34 = arith.maximumf %31, %33 : vector<64x1xf32>
      %35 = arith.subf %31, %34 : vector<64x1xf32>
      %36 = math.exp %35 : vector<64x1xf32>
      %37 = vector.broadcast %34 : vector<64x1xf32> to vector<64x128xf32>
      %38 = arith.subf %7, %37 : vector<64x128xf32>
      %39 = math.exp %38 : vector<64x128xf32>
      %c0_19 = arith.constant 0 : index
      %c0_20 = arith.constant 0 : index
      %40 = vector.load %arg9[%c0_19, %c0_20] : memref<64x1xf32, #tpu.memory_space<vmem>>, vector<64x1xf32>
      %41 = arith.mulf %36, %40 : vector<64x1xf32>
      %cst_21 = arith.constant dense<0.000000e+00> : vector<64xf32>
      %42 = vector.multi_reduction <add>, %39, %cst_21 [1] : vector<64x128xf32> to vector<64xf32>
      %43 = vector.shape_cast %42 : vector<64xf32> to vector<64x1xf32>
      %44 = arith.addf %41, %43 : vector<64x1xf32>
      %c0_22 = arith.constant 0 : index
      %c0_23 = arith.constant 0 : index
      %45 = vector.load %arg9[%c0_22, %c0_23] : memref<64x1xf32, #tpu.memory_space<vmem>>, vector<64x1xf32>
      tpu.vector_store %arg9[%c0_22, %c0_23], %44 {strides = array<i32>} : memref<64x1xf32, #tpu.memory_space<vmem>>, vector<64x1xf32>,
      %c0_24 = arith.constant 0 : index
      %c0_25 = arith.constant 0 : index
      %46 = vector.load %arg8[%c0_24, %c0_25] : memref<64x1xf32, #tpu.memory_space<vmem>>, vector<64x1xf32>
      tpu.vector_store %arg8[%c0_24, %c0_25], %34 {strides = array<i32>} : memref<64x1xf32, #tpu.memory_space<vmem>>, vector<64x1xf32>,
      %c0_26 = arith.constant 0 : index
      %c0_27 = arith.constant 0 : index
      %47 = vector.load %arg10[%c0_26, %c0_27] : memref<64x1xf32, #tpu.memory_space<vmem>>, vector<64x1xf32>
      %cst_28 = arith.constant 0.000000e+00 : f32
      %48 = vector.broadcast %cst_28 : f32 to vector<64x128xf32>
      %49 = arith.select %12, %7, %48 : vector<64x128xi1>, vector<64x128xf32>
      %cst_29 = arith.constant dense<0.000000e+00> : vector<64xf32>
      %50 = vector.multi_reduction <add>, %49, %cst_29 [1] : vector<64x128xf32> to vector<64xf32>
      %51 = vector.shape_cast %50 : vector<64xf32> to vector<64x1xf32>
      %52 = arith.addf %47, %51 : vector<64x1xf32>
      %c0_30 = arith.constant 0 : index
      %c0_31 = arith.constant 0 : index
      %53 = vector.load %arg10[%c0_30, %c0_31] : memref<64x1xf32, #tpu.memory_space<vmem>>, vector<64x1xf32>
      tpu.vector_store %arg10[%c0_30, %c0_31], %52 {strides = array<i32>} : memref<64x1xf32, #tpu.memory_space<vmem>>, vector<64x1xf32>,
    } else {
    }
    %c0_i32_14 = arith.constant 0 : i32
    %28 = arith.cmpi eq, %arg1, %c0_i32_14 : i32
    %29 = arith.extui %28 : i1 to i32
    %c0_i32_15 = arith.constant 0 : i32
    %30 = arith.cmpi ne, %29, %c0_i32_15 : i32
    scf.if %30 {
      %c0_16 = arith.constant 0 : index
      %c0_17 = arith.constant 0 : index
      %31 = vector.load %arg8[%c0_16, %c0_17] : memref<64x1xf32, #tpu.memory_space<vmem>>, vector<64x1xf32>
      %c0_18 = arith.constant 0 : index
      %c0_19 = arith.constant 0 : index
      %32 = vector.load %arg9[%c0_18, %c0_19] : memref<64x1xf32, #tpu.memory_space<vmem>>, vector<64x1xf32>
      %33 = math.log %32 : vector<64x1xf32>
      %34 = arith.addf %31, %33 : vector<64x1xf32>
      %c0_20 = arith.constant 0 : index
      %c0_21 = arith.constant 0 : index
      %35 = vector.load %arg4[%c0_20, %c0_21] : memref<64x1xf32, #tpu.memory_space<vmem>>, vector<64x1xf32>
      %c0_22 = arith.constant 0 : index
      %c0_23 = arith.constant 0 : index
      %36 = vector.load %arg10[%c0_22, %c0_23] : memref<64x1xf32, #tpu.memory_space<vmem>>, vector<64x1xf32>
      %37 = arith.mulf %35, %34 : vector<64x1xf32>
      %38 = arith.subf %36, %37 : vector<64x1xf32>
      %39 = arith.divf %38, %35 : vector<64x1xf32>
      %c64_i32_24 = arith.constant 64 : i32
      %40 = arith.muli %arg0, %c64_i32_24 : i32
      %41 = tpu.iota {dimensions = array<i32: 0>} : vector<64x1xi32>
      %42 = vector.broadcast %40 : i32 to vector<64x1xi32>
      %43 = arith.addi %42, %41 : vector<64x1xi32>
      %c8_i32_25 = arith.constant 8 : i32
      %44 = vector.broadcast %c8_i32_25 : i32 to vector<64x1xi32>
      %45 = arith.cmpi slt, %43, %44 : vector<64x1xi32>
      %cst_26 = arith.constant -1.000000e+00 : f32
      %46 = vector.broadcast %cst_26 : f32 to vector<64x1xf32>
      %47 = arith.mulf %46, %39 : vector<64x1xf32>
      %cst_27 = arith.constant 0.000000e+00 : f32
      %48 = vector.broadcast %cst_27 : f32 to vector<64x1xf32>
      %49 = arith.select %45, %47, %48 : vector<64x1xi1>, vector<64x1xf32>
      %c0_28 = arith.constant 0 : index
      %c0_29 = arith.constant 0 : index
      %50 = vector.load %arg7[%c0_28, %c0_29] : memref<64x1xf32, #tpu.memory_space<vmem>>, vector<64x1xf32>
      tpu.vector_store %arg7[%c0_28, %c0_29], %49 {strides = array<i32>} : memref<64x1xf32, #tpu.memory_space<vmem>>, vector<64x1xf32>,
    } else {
    }
    return
  }
  func.func @transform_0(%arg0: i32, %arg1: i32) -> (i32, i32) {
    %c0_i32 = arith.constant 0 : i32
    %c0_i32_0 = arith.constant 0 : i32
    return %arg0, %c0_i32 : i32, i32
  }
  func.func @transform_1(%arg0: i32, %arg1: i32) -> (i32, i32) {
    %c0_i32 = arith.constant 0 : i32
    %c0_i32_0 = arith.constant 0 : i32
    return %c0_i32, %arg1 : i32, i32
  }
  func.func @transform_2(%arg0: i32, %arg1: i32) -> (i32, i32) {
    %c0_i32 = arith.constant 0 : i32
    %c0_i32_0 = arith.constant 0 : i32
    return %arg0, %c0_i32 : i32, i32
  }
  func.func @transform_3(%arg0: i32, %arg1: i32) -> (i32, i32) {
    %c0_i32 = arith.constant 0 : i32
    %c0_i32_0 = arith.constant 0 : i32
    return %arg0, %c0_i32 : i32, i32
  }
  func.func @transform_4(%arg0: i32, %arg1: i32) -> (i32, i32) {
    %c0_i32 = arith.constant 0 : i32
    %c0_i32_0 = arith.constant 0 : i32
    return %arg1, %c0_i32 : i32, i32
  }
  func.func @transform_5(%arg0: i32, %arg1: i32) -> (i32, i32) {
    %c0_i32 = arith.constant 0 : i32
    %c0_i32_0 = arith.constant 0 : i32
    return %arg0, %c0_i32 : i32, i32
  }
}

</mosaic_0001>

<bundles_post_ra>
// kernel: tpu_custom_call.1
= control target key start
LH: loop header
LB: loop body
LE: loop exit
PB: predicated region body
PF: predicated region fallthrough
CT: control target
= control target key end

     0   :  { %s1598_s18 = smov 0   ;;  %s1600_s19 = smov 0   ;;  %s2092_s0 = inlined_call_operand.vmem [shape: s32[128,1], index: 0, kind: input, shape index: {}]   ;;  %s2093_s1 = inlined_call_operand.vmem [shape: s32[1,128], index: 1, kind: input, shape index: {}]   ;;  %s2094_s2 = inlined_call_operand.vmem [shape: f32[128,1], index: 2, kind: input, shape index: {}]   ;;  %s2095_s3 = inlined_call_operand.vmem [shape: f32[128,128], index: 3, kind: input, shape index: {}]   ;;  %s2096_s4 = inlined_call_operand.vmem [shape: f32[128,128], index: 4, kind: input, shape index: {}]   ;;  %s2097_s5 = inlined_call_operand.vmem [shape: f32[128,1], index: 5, kind: output, shape index: {}]  }
   0x1   :  { %s1602_s20 = smov 0  }
   0x2 LB: > { %s27_s21 = sadd.s32 1, %s1559_s19  ;;  %p1318_p0 = scmp.ge.s32.totalorder %s1563_s20, 1  ;;  %s1563_s20 = sphi %s1602_s20, %s15_s20   ;;  %s1559_s19 = sphi %s1600_s19, %s2145_s19   ;;  %s1555_s18 = sphi %s1598_s18, %s2144_s18  }
   0x3   : > { %p29_p1 = scmp.ge.s32.totalorder %s27_s21, 2  ;;  %p241_p2 = scmp.lt.s32.totalorder %s1563_s20, 3 }
   0x5   : > { %s2147_s21 = smov (%p29_p1, %s27_s21), 0  ;;  %p242_p3 = pnand %p1318_p0, %p241_p2 }
   0x6   : > { %v357_v0 = vld [vmem:[%s2096_s4] sm:$0xff] (!%p242_p3)  ;;  %v358_v1 = vld [vmem:[%s2096_s4 + $0x8] sm:$0xff] (!%p242_p3)  ;;  %v359_v2 = vld [vmem:[%s2096_s4 + $0x10] sm:$0xff] (!%p242_p3)  ;;  %s1319_s28 = sshll.u32 (!%p242_p3), %s1555_s18, 3  ;;  %vm2098_vm0 = vcmask (!%p242_p3), 7168   ;;  %v544_v33 = vlaneseq (!%p242_p3) }
   0x7   : > { %245 = sbr.rel (%p242_p3) target bundleno = 777 (0x309), region = 40  ;;  %v1400_v3 = vpack.c.bf16 (!%p242_p3), %v358_v1, %v357_v0  ;;  %v360_v4 = vld [vmem:[%s2096_s4 + $0x18] sm:$0xff] (!%p242_p3)  ;;  %p288_p4 = scmp.lt.s32.totalorder (!%p242_p3), %s1319_s28, 15  ;;  %v361_v6 = vld [vmem:[%s2096_s4 + $0x20] sm:$0xff] (!%p242_p3)  ;;  %v362_v7 = vld [vmem:[%s2096_s4 + $0x28] sm:$0xff] (!%p242_p3) }
   0x8   : > { %v1404_v5 = vpack.c.bf16 (!%p242_p3), %v360_v4, %v359_v2  ;;  %v1408_v9 = vpack.c.bf16 (!%p242_p3), %v362_v7, %v361_v6  ;;  %v363_v11 = vld [vmem:[%s2096_s4 + $0x30] sm:$0xff] (!%p242_p3)  ;;  %v364_v12 = vld [vmem:[%s2096_s4 + $0x38] sm:$0xff] (!%p242_p3)  ;;  %v365_v14 = vld [vmem:[%s2096_s4 + $0x40] sm:$0xff] (!%p242_p3)  ;;  %v1565_v32 = vmov (!%p242_p3), -1e+30   ;;  %v545_v34 = vshrl.u32 (!%p242_p3), %v544_v33, 7 }
   0x9   : > { %1401 = vmatprep.subr.bf16.mxu0 (!%p242_p3), %v1400_v3  ;;  %1432 = vmatprep.subr.bf16.mxu1 (!%p242_p3), %v1400_v3  ;;  %v1412_v13 = vpack.c.bf16 (!%p242_p3), %v364_v12, %v363_v11  ;;  %v366_v15 = vld [vmem:[%s2096_s4 + $0x48] sm:$0xff] (!%p242_p3)  ;;  %v367_v17 = vld [vmem:[%s2096_s4 + $0x50] sm:$0xff] (!%p242_p3)  ;;  %v368_v18 = vld [vmem:[%s2096_s4 + $0x58] sm:$0xff] (!%p242_p3)  ;;  %326 = vst.msk [vmem:[#allocation2 + $0x8] sm:$0xff] (!%p242_p3), %vm2098_vm0, %v1565_v32  ;;  %v563_v39 = vand.u32 (!%p242_p3), 127, %v544_v33 }
   0xa   : > { %1403 = vmatpush3.bf16.xpose.msra.mxu0 (!%p242_p3), %v1400_v3  ;;  %1440 = vmatpush3.bf16.xpose.msra.mxu1 (!%p242_p3), %v1400_v3  ;;  %v1416_v16 = vpack.c.bf16 (!%p242_p3), %v366_v15, %v365_v14  ;;  %v1420_v19 = vpack.c.bf16 (!%p242_p3), %v368_v18, %v367_v17  ;;  %v369_v20 = vld [vmem:[%s2096_s4 + $0x60] sm:$0xff] (!%p242_p3)  ;;  %v370_v21 = vld [vmem:[%s2096_s4 + $0x68] sm:$0xff] (!%p242_p3)  ;;  %v371_v23 = vld [vmem:[%s2096_s4 + $0x70] sm:$0xff] (!%p242_p3)  ;;  %325 = vst.msk [vmem:[#allocation2] sm:$0xff] (!%p242_p3), %vm2098_vm0, %v1565_v32  ;;  %v546_v35 = vadd.s32 (!%p242_p3), 8, %v545_v34  ;;  %v550_v37 = vadd.s32 (!%p242_p3), 40, %v545_v34 }
   0xb   : > { %1405 = vmatprep.subr.bf16.mxu0 (!%p242_p3), %v1404_v5  ;;  %1433 = vmatprep.subr.bf16.mxu1 (!%p242_p3), %v1404_v5  ;;  %v1424_v22 = vpack.c.bf16 (!%p242_p3), %v370_v21, %v369_v20  ;;  %v372_v24 = vld [vmem:[%s2096_s4 + $0x78] sm:$0xff] (!%p242_p3)  ;;  %327 = vst.msk [vmem:[#allocation2 + $0x10] sm:$0xff] (!%p242_p3), %vm2098_vm0, %v1565_v32  ;;  %328 = vst.msk [vmem:[#allocation2 + $0x18] sm:$0xff] (!%p242_p3), %vm2098_vm0, %v1565_v32  ;;  %v548_v41 = vadd.s32 (!%p242_p3), 24, %v545_v34  ;;  %v547_v42 = vadd.s32 (!%p242_p3), 16, %v545_v34  ;;  %vm566_vm1 = vcmp.lt.s32.totalorder (!%p242_p3), %v563_v39, 8 }
   0xc   : > { %v1428_v25 = vpack.c.bf16 (!%p242_p3), %v372_v24, %v371_v23  ;;  %329 = vst.msk [vmem:[#allocation2 + $0x20] sm:$0xff] (!%p242_p3), %vm2098_vm0, %v1565_v32  ;;  %330 = vst.msk [vmem:[#allocation2 + $0x28] sm:$0xff] (!%p242_p3), %vm2098_vm0, %v1565_v32  ;;  %v549_v44 = vadd.s32 (!%p242_p3), 32, %v545_v34  ;;  %v551_v47 = vadd.s32 (!%p242_p3), 48, %v545_v34  ;;  %v552_v49 = vadd.s32 (!%p242_p3), 56, %v545_v34 }
   0xd   : > { %331 = vst.msk [vmem:[#allocation2 + $0x30] sm:$0xff] (!%p242_p3), %vm2098_vm0, %v1565_v32  ;;  %332 = vst.msk [vmem:[#allocation2 + $0x38] sm:$0xff] (!%p242_p3), %vm2098_vm0, %v1565_v32  ;;  %v1566_v20 = vmov (!%p242_p3), 0   ;;  %v1567_v21 = vmov (!%p242_p3), 0.0  }
   0xe   : > { %s2149_s28 = smov (!%p288_p4, %s1319_s28), 15  ;;  %1476 = vset.pattern.permute.xlu1 %v1566_v20  ;;  %1475 = vset.pattern.permute.xlu0 %v1566_v20  ;;  %334 = vst.msk [vmem:[#allocation3 + $0x8] sm:$0xff] %vm2098_vm0, %v1567_v21  ;;  %333 = vst.msk [vmem:[#allocation3] sm:$0xff] %vm2098_vm0, %v1567_v21 }
   0xf   : > { %s1631_s6 = sshll.u32 %s2149_s28, 3  ;;  %335 = vst.msk [vmem:[#allocation3 + $0x10] sm:$0xff] %vm2098_vm0, %v1567_v21  ;;  %336 = vst.msk [vmem:[#allocation3 + $0x18] sm:$0xff] %vm2098_vm0, %v1567_v21 }
  0x10   : > { %s1643_s13 = scalar_lea.vmem %s2095_s3, %s1631_s6  ;;  %337 = vst.msk [vmem:[#allocation3 + $0x20] sm:$0xff] %vm2098_vm0, %v1567_v21  ;;  %338 = vst.msk [vmem:[#allocation3 + $0x28] sm:$0xff] %vm2098_vm0, %v1567_v21  ;;  %s1871_s16 = scalar_lea.vmem %s2092_s0, %s1631_s6 }
  0x11   : > { %v349_v8 = vld [vmem:[%s1643_s13] sm:$0xff]  ;;  %v350_v26 = vld [vmem:[%s1643_s13 + $0x8] sm:$0xff]  ;;  %v351_v28 = vld [vmem:[%s1643_s13 + $0x10] sm:$0xff]  ;;  %339 = vst.msk [vmem:[#allocation3 + $0x30] sm:$0xff] %vm2098_vm0, %v1567_v21  ;;  %s2001_s25 = scalar_lea.vmem %s2094_s2, %s1631_s6  ;;  %s2044_s28 = scalar_lea.vmem %s2097_s5, %s1631_s6 }
  0x12   : > { %1388 = vmatprep.mubr.f32.mxu0 %v349_v8  ;;  %v353_v10 = vld [vmem:[%s1643_s13 + $0x20] sm:$0xff]  ;;  %1407 = vmatpush3.bf16.xpose.msra.mxu0 %v1404_v5  ;;  %v354_v27 = vld [vmem:[%s1643_s13 + $0x28] sm:$0xff]  ;;  %v355_v29 = vld [vmem:[%s1643_s13 + $0x30] sm:$0xff]  ;;  %340 = vst.msk [vmem:[#allocation3 + $0x38] sm:$0xff] %vm2098_vm0, %v1567_v21 }
  0x13   : > { %1394 = vmatprep.mubr.f32.mxu1 %v353_v10  ;;  %1441 = vmatpush3.bf16.xpose.msra.mxu1 %v1404_v5  ;;  %v352_v30 = vld [vmem:[%s1643_s13 + $0x18] sm:$0xff]  ;;  %341 = vst.msk [vmem:[#allocation4] sm:$0xff] %vm2098_vm0, %v1567_v21  ;;  %342 = vst.msk [vmem:[#allocation4 + $0x8] sm:$0xff] %vm2098_vm0, %v1567_v21  ;;  %v1840_v23 = vld [vmem:[#allocation2 + $0x28] sm:$0xff] }
  0x14   : > { %1409 = vmatprep.subr.bf16.mxu0 %v1408_v9  ;;  %1434 = vmatprep.subr.bf16.mxu1 %v1408_v9  ;;  %v356_v31 = vld [vmem:[%s1643_s13 + $0x38] sm:$0xff]  ;;  %s1328_s13 = sshll.u32 %s1555_s18, 6  ;;  %343 = vst.msk [vmem:[#allocation4 + $0x10] sm:$0xff] %vm2098_vm0, %v1567_v21  ;;  %344 = vst.msk [vmem:[#allocation4 + $0x18] sm:$0xff] %vm2098_vm0, %v1567_v21 }
  0x15   : > { %v553_v36 = vstv %s1328_s13  ;;  %345 = vst.msk [vmem:[#allocation4 + $0x20] sm:$0xff] %vm2098_vm0, %v1567_v21  ;;  %346 = vst.msk [vmem:[#allocation4 + $0x28] sm:$0xff] %vm2098_vm0, %v1567_v21 }
  0x16   : > { %v1692_v38 = vadd.s32 %v553_v36, %v546_v35  ;;  %v1694_v40 = vadd.s32 %v553_v36, %v550_v37  ;;  %v1697_v43 = vadd.s32 %v553_v36, %v545_v34  ;;  %v1700_v45 = vadd.s32 %v553_v36, %v548_v41  ;;  %347 = vst.msk [vmem:[#allocation4 + $0x30] sm:$0xff] %vm2098_vm0, %v1567_v21  ;;  %v1875_v37 = vld [vmem:[#allocation2 + $0x10] sm:$0xff] }
  0x17   : > { %v1702_v46 = vadd.s32 %v553_v36, %v547_v42  ;;  %v1719_v57 = vadd.s32 %v553_v36, %v549_v44  ;;  %v1723_v58 = vadd.s32 %v553_v36, %v551_v47  ;;  %v1742_v63 = vadd.s32 %v553_v36, %v552_v49  ;;  %348 = vst.msk [vmem:[#allocation4 + $0x38] sm:$0xff] %vm2098_vm0, %v1567_v21  ;;  %v1873_v36 = vld [vmem:[#allocation2 + $0x20] sm:$0xff]  ;;  %v487_v44 = vld [vmem:[%s1871_s16 + $0x8] sm:$0xff] }
  0x18   : > { %vm568_vm2 = vcmp.ne.s32.totalorder %v1692_v38, %v563_v39  ;;  %vm572_vm3 = vcmp.ne.s32.totalorder %v1694_v40, %v563_v39  ;;  %vm567_vm6 = vcmp.ne.s32.totalorder %v1697_v43, %v563_v39  ;;  %vm570_vm7 = vcmp.ne.s32.totalorder %v1700_v45, %v563_v39 }
  0x19   : > { %vm1705_vm4 = vmand %vm566_vm1, %vm568_vm2  ;;  %vm569_vm8 = vcmp.ne.s32.totalorder %v1702_v46, %v563_v39  ;;  %vm571_vm11 = vcmp.ne.s32.totalorder %v1719_v57, %v563_v39  ;;  %vm573_vm13 = vcmp.ne.s32.totalorder %v1723_v58, %v563_v39  ;;  %vm574_vm14 = vcmp.ne.s32.totalorder %v1742_v63, %v563_v39 }
  0x1a   : > { %1411 = vmatpush3.bf16.xpose.msra.mxu0 %v1408_v9  ;;  %vm1710_vm5 = vmand %vm566_vm1, %vm572_vm3 }
  0x1b   : > { %1442 = vmatpush3.bf16.xpose.msra.mxu1 %v1408_v9  ;;  %1413 = vmatprep.subr.bf16.mxu0 %v1412_v13  ;;  %vm1738_vm9 = vmand %vm566_vm1, %vm567_vm6 }
  0x1c   : > { %1435 = vmatprep.subr.bf16.mxu1 %v1412_v13  ;;  %vm1747_vm10 = vmand %vm566_vm1, %vm570_vm7 }
  0x1d   : > { %vm1759_vm12 = vmand %vm566_vm1, %vm569_vm8 }
  0x1e   : > { %vm1779_vm15 = vmand %vm566_vm1, %vm571_vm11 }
  0x1f   : > { %vm1794_vm2 = vmand %vm566_vm1, %vm573_vm13 }
  0x20   : > { %vm1799_vm3 = vmand %vm566_vm1, %vm574_vm14 }
  0x22   : > { %1415 = vmatpush3.bf16.xpose.msra.mxu0 %v1412_v13 }
  0x23   : > { %1443 = vmatpush3.bf16.xpose.msra.mxu1 %v1412_v13  ;;  %1417 = vmatprep.subr.bf16.mxu0 %v1416_v16 }
  0x24   : > { %1436 = vmatprep.subr.bf16.mxu1 %v1416_v16 }
  0x2a   : > { %1419 = vmatpush3.bf16.xpose.msra.mxu0 %v1416_v16 }
  0x2b   : > { %1444 = vmatpush3.bf16.xpose.msra.mxu1 %v1416_v16  ;;  %1421 = vmatprep.subr.bf16.mxu0 %v1420_v19 }
  0x2c   : > { %1437 = vmatprep.subr.bf16.mxu1 %v1420_v19 }
  0x32   : > { %1423 = vmatpush3.bf16.xpose.msra.mxu0 %v1420_v19 }
  0x33   : > { %1445 = vmatpush3.bf16.xpose.msra.mxu1 %v1420_v19  ;;  %1425 = vmatprep.subr.bf16.mxu0 %v1424_v22 }
  0x34   : > { %1438 = vmatprep.subr.bf16.mxu1 %v1424_v22 }
  0x3a   : > { %1427 = vmatpush3.bf16.xpose.msra.mxu0 %v1424_v22 }
  0x3b   : > { %1446 = vmatpush3.bf16.xpose.msra.mxu1 %v1424_v22  ;;  %1429 = vmatprep.subr.bf16.mxu0 %v1428_v25  ;;  %v1838_v22 = vld [vmem:[#allocation2 + $0x8] sm:$0xff] }
  0x3c   : > { %1439 = vmatprep.subr.bf16.mxu1 %v1428_v25 }
  0x42   : > { %1431 = vmatpush3.bf16.xpose.msra.mxu0 %v1428_v25 }
  0x43   : > { %1447 = vmatpush3.bf16.xpose.msra.mxu1 %v1428_v25 }
  0x49   : > { %1389 = vmatmul.mubr.f32.vlgmr.msra.gmra.mrb[0].mxu0 %v350_v26 }
  0x4a   : > { %1395 = vmatmul.mubr.f32.vlgmr.msra.gmra.mrb[0].mxu1 %v354_v27  ;;  %1391 = vmatprep.mubr.f32.mxu0 %v351_v28  ;;  %v1848_v28 = vld [vmem:[#allocation2] sm:$0xff] }
  0x4b   : > { %1397 = vmatprep.mubr.f32.mxu1 %v355_v29  ;;  %v1850_v29 = vld [vmem:[#allocation2 + $0x18] sm:$0xff] }
  0x4d   : > { %1392 = vmatmul.mubr.f32.gmra.mrb[2].mxu0 %v352_v30 }
  0x4e   : > { %1398 = vmatmul.mubr.f32.gmra.mrb[2].mxu1 %v356_v31 }
 0x11c   : > { %v1390_v50 = vpop.f32.mrb[0].mxu0 }
 0x11d   : > { %v1396_v51 = vpop.f32.mrb[0].mxu1  ;;  %v1715_v53 = vmul.f32 14.285714, %v1390_v50  ;;  %v439_v54 = vpop.f32.mrb[1].mxu0 }
 0x11e   : > { %v1717_v55 = vmul.f32 14.285714, %v1396_v51  ;;  %v459_v56 = vpop.f32.mrb[1].mxu1  ;;  %v1725_v59 = vmul.f32 14.285714, %v439_v54  ;;  %v1894_v51 = vld [vmem:[#allocation2 + $0x30] sm:$0xff] }
 0x11f   : > { %v1730_v60 = vsel %vm1705_vm4, %v1715_v53, -1e+30  ;;  %v1764_v8 = vmul.f32 14.285714, %v459_v56  ;;  %v1896_v54 = vld [vmem:[#allocation2 + $0x38] sm:$0xff] }
 0x120   : > { %v1735_v61 = vsel %vm1710_vm5, %v1717_v55, -1e+30  ;;  %611 = vmax.xlane.f32.xlu0 %v1730_v60  ;;  %v1393_v0 = vpop.f32.mrb[2].mxu0  ;;  %v1769_v9 = vsel %vm1738_vm9, %v1725_v59, -1e+30 }
 0x121   : > { %619 = vmax.xlane.f32.xlu1 %v1735_v61  ;;  %v1399_v2 = vpop.f32.mrb[2].mxu1  ;;  %v1751_v3 = vmul.f32 14.285714, %v1393_v0  ;;  %v449_v4 = vpop.f32.mrb[3].mxu0  ;;  %v1806_v17 = vsel %vm1779_vm15, %v1764_v8, -1e+30 }
 0x122   : > { %v469_v5 = vpop.f32.mrb[3].mxu1  ;;  %v1754_v6 = vmul.f32 14.285714, %v449_v4  ;;  %v1789_v13 = vmul.f32 14.285714, %v1399_v2  ;;  %v489_v2 = vld [vmem:[%s1871_s16 + $0x18] sm:$0xff] }
 0x123   : > { %v1774_v10 = vsel %vm1747_vm10, %v1751_v3, -1e+30  ;;  %v1791_v14 = vmul.f32 14.285714, %v469_v5 }
 0x124   : > { %609 = vmax.xlane.f32.xlu0 %v1769_v9  ;;  %v1787_v12 = vsel %vm1759_vm12, %v1754_v6, -1e+30  ;;  %v1818_v19 = vsel %vm1799_vm3, %v1789_v13, -1e+30 }
 0x125   : > { %615 = vmax.xlane.f32.xlu1 %v1774_v10  ;;  %v1813_v18 = vsel %vm1794_vm2, %v1791_v14, -1e+30 }
 0x128   : > { %617 = vmax.xlane.f32.xlu0 %v1806_v17 }
 0x129   : > { %613 = vmax.xlane.f32.xlu1 %v1787_v12 }
 0x12c   : > { %621 = vmax.xlane.f32.xlu0 %v1813_v18 }
 0x12d   : > { %623 = vmax.xlane.f32.xlu1 %v1818_v19 }
 0x1ad   : > { %v612_v24 = vpop.xlane.xlu0 %611 }
 0x1ae   : > { %v620_v25 = vpop.xlane.xlu1 %619  ;;  %v1843_v26 = vmax.f32 %v1838_v22, %v612_v24 }
 0x1af   : > { %v1846_v27 = vmax.f32 %v1840_v23, %v620_v25 }
 0x1b0   : > { %v634_v30 = vsub.f32 %v1838_v22, %v1843_v26  ;;  %771 = vst.msk [vmem:[#allocation2 + $0x8] sm:$0xff] %vm2098_vm0, %v1843_v26  ;;  %664 = vperm.xlu1 %1476, %v1843_v26   ;;  %v722_v22 = vld [vmem:[#allocation3 + $0x8] sm:$0xff] }
 0x1b1   : > { %v638_v31 = vsub.f32 %v1840_v23, %v1846_v27  ;;  %775 = vst.msk [vmem:[#allocation2 + $0x28] sm:$0xff] %vm2098_vm0, %v1846_v27  ;;  %v610_v32 = vpop.xlane.xlu0 %609 }
 0x1b2   : > { %v616_v33 = vpop.xlane.xlu1 %615  ;;  %v1862_v34 = vmax.f32 %v1848_v28, %v610_v32  ;;  %v491_v32 = vld [vmem:[%s1871_s16 + $0x28] sm:$0xff]  ;;  %v643_v52 = vmul.f32 1.442695, %v634_v30 }
 0x1b3   : > { %v1865_v35 = vmax.f32 %v1850_v29, %v616_v33  ;;  %v493_v33 = vld [vmem:[%s1871_s16 + $0x38] sm:$0xff] }
 0x1b4   : > { %770 = vst.msk [vmem:[#allocation2] sm:$0xff] %vm2098_vm0, %v1862_v34  ;;  %659 = vperm.xlu0 %1475, %v1862_v34   ;;  %684 = vperm.xlu1 %1476, %v1846_v27   ;;  %v2116_v11 = vsub.f32 %v1848_v28, %v1862_v34 }
 0x1b5   : > { %773 = vst.msk [vmem:[#allocation2 + $0x18] sm:$0xff] %vm2098_vm0, %v1865_v35  ;;  %v618_v42 = vpop.xlane.xlu0 %617 }
 0x1b6   : > { %v614_v47 = vpop.xlane.xlu1 %613  ;;  %v1889_v49 = vmax.f32 %v1873_v36, %v618_v42  ;;  %v486_v42 = vld [vmem:[%s1871_s16] sm:$0xff] }
 0x1b7   : > { %v1892_v50 = vmax.f32 %v1875_v37, %v614_v47  ;;  %v490_v47 = vld [vmem:[%s1871_s16 + $0x20] sm:$0xff] }
 0x1b8   : > { %774 = vst.msk [vmem:[#allocation2 + $0x20] sm:$0xff] %vm2098_vm0, %v1889_v49  ;;  %679 = vperm.xlu1 %1476, %v1889_v49   ;;  %499 = vperm.xlu0 %1475, %v487_v44   ;;  %v488_v44 = vld [vmem:[%s1871_s16 + $0x10] sm:$0xff] }
 0x1b9   : > { %772 = vst.msk [vmem:[#allocation2 + $0x10] sm:$0xff] %vm2098_vm0, %v1892_v50  ;;  %v622_v4 = vpop.xlane.xlu0 %621  ;;  %v2118_v23 = vsub.f32 %v1875_v37, %v1892_v50  ;;  %v721_v37 = vld [vmem:[#allocation3] sm:$0xff] }
 0x1ba   : > { %v624_v5 = vpop.xlane.xlu1 %623  ;;  %v1909_v20 = vmax.f32 %v1894_v51, %v622_v4 }
 0x1bb   : > { %v1912_v21 = vmax.f32 %v1896_v54, %v624_v5  ;;  %v645_v26 = vmul.f32 1.442695, %v2118_v23  ;;  %v779_v23 = vld [vmem:[#allocation4 + $0x8] sm:$0xff] }
 0x1bc   : > { %674 = vperm.xlu1 %1476, %v1865_v35   ;;  %505 = vperm.xlu0 %1475, %v489_v2   ;;  %776 = vst.msk [vmem:[#allocation2 + $0x30] sm:$0xff] %vm2098_vm0, %v1909_v20  ;;  %v492_v2 = vld [vmem:[%s1871_s16 + $0x30] sm:$0xff]  ;;  %v2119_v28 = vsub.f32 %v1894_v51, %v1909_v20 }
 0x1bd   : > { %777 = vst.msk [vmem:[#allocation2 + $0x38] sm:$0xff] %vm2098_vm0, %v1912_v21 }
 0x1be   : > { %v653_v34 = vmul.f32 1.442695, %v2119_v28  ;;  %v2012_v28 = vld [vmem:[%s2001_s25 + $0x10] sm:$0xff] }
 0x1c0   : > { %669 = vperm.xlu1 %1476, %v1892_v50   ;;  %511 = vperm.xlu0 %1475, %v491_v32   ;;  %v2121_v50 = vsub.f32 %v1896_v54, %v1912_v21 }
 0x1c4   : > { %689 = vperm.xlu1 %1476, %v1909_v20   ;;  %517 = vperm.xlu0 %1475, %v493_v33  }
 0x1c8   : > { %694 = vperm.xlu1 %1476, %v1912_v21   ;;  %v723_v21 = vld [vmem:[#allocation3 + $0x10] sm:$0xff] }
 0x1cc   : > { %496 = vperm.xlu1 %1476, %v486_v42  }
 0x1d0   : > { %502 = vperm.xlu1 %1476, %v488_v44  }
 0x1d4   : > { %508 = vperm.xlu1 %1476, %v490_v47  }
 0x1d8   : > { %514 = vperm.xlu1 %1476, %v492_v2  }
 0x22f   : > { %v665_v4 = vpop.permute.xlu1 %664 }
 0x230   : > { %v698_v5 = vsub.f32 %v1730_v60, %v665_v4 }
 0x232   : > { %v707_v25 = vmul.f32 1.442695, %v698_v5 }
 0x233   : > { %v660_v24 = vpop.permute.xlu0 %659  ;;  %v685_v32 = vpop.permute.xlu1 %684 }
 0x234   : > { %1477 = vpow2.f32 %v707_v25  ;;  %v702_v0 = vsub.f32 %v1735_v61, %v685_v32  ;;  %v697_v33 = vsub.f32 %v1769_v9, %v660_v24 }
 0x236   : > { %v715_v41 = vmul.f32 1.442695, %v702_v0  ;;  %v705_v44 = vmul.f32 1.442695, %v697_v33 }
 0x237   : > { %v680_v39 = vpop.permute.xlu1 %679 }
 0x238   : > { %v701_v42 = vsub.f32 %v1806_v17, %v680_v39  ;;  %1479 = vpow2.f32 %v715_v41 }
 0x23a   : > { %v713_v47 = vmul.f32 1.442695, %v701_v42  ;;  %v500_v42 = vpop.permute.xlu0 %499 }
 0x23b   : > { %v675_v56 = vpop.permute.xlu1 %674 }
 0x23c   : > { %1481 = vpow2.f32 %v713_v47  ;;  %v700_v2 = vsub.f32 %v1774_v10, %v675_v56 }
 0x23d   : > { %1483 = vpow2.f32 %v705_v44 }
 0x23e   : > { %v1478_v60 = vpop.eup %1477  ;;  %v711_v4 = vmul.f32 1.442695, %v700_v2  ;;  %v506_v2 = vpop.permute.xlu0 %505 }
 0x23f   : > { %v670_v5 = vpop.permute.xlu1 %669  ;;  %739 = vadd.xlane.f32.xlu0 %v1478_v60 }
 0x240   : > { %1485 = vpow2.f32 %v711_v4  ;;  %v699_v61 = vsub.f32 %v1787_v12, %v670_v5 }
 0x242   : > { %v709_v9 = vmul.f32 1.442695, %v699_v61  ;;  %v1480_v0 = vpop.eup %1479  ;;  %v512_v61 = vpop.permute.xlu0 %511 }
 0x243   : > { %v690_v24 = vpop.permute.xlu1 %689  ;;  %747 = vadd.xlane.f32.xlu1 %v1480_v0 }
 0x244   : > { %1487 = vpow2.f32 %v709_v9  ;;  %v703_v17 = vsub.f32 %v1813_v18, %v690_v24  ;;  %v1327_v18 = vld [vmem:[%s2093_s1] ss:$0 sm:$0xff] }
 0x245   : > { %vm524_vm6 = vcmp.eq.s32.totalorder %v500_v42, %v1327_v18  ;;  %vm526_vm13 = vcmp.eq.s32.totalorder %v506_v2, %v1327_v18  ;;  %v725_v24 = vld [vmem:[#allocation3 + $0x20] sm:$0xff]  ;;  %v724_v42 = vld [vmem:[#allocation3 + $0x18] sm:$0xff] }
 0x246   : > { %v1482_v39 = vpop.eup %1481  ;;  %v717_v41 = vmul.f32 1.442695, %v703_v17  ;;  %vm594_vm11 = vmand %vm1705_vm4, %vm524_vm6  ;;  %v518_v48 = vpop.permute.xlu0 %517 }
 0x247   : > { %v1484_v25 = vpop.eup %1483  ;;  %v695_v32 = vpop.permute.xlu1 %694  ;;  %745 = vadd.xlane.f32.xlu0 %v1482_v39  ;;  %v787_v0 = vsel %vm594_vm11, %v1715_v53, 0.0 }
 0x248   : > { %1489 = vpow2.f32 %v717_v41  ;;  %v704_v10 = vsub.f32 %v1818_v19, %v695_v32  ;;  %737 = vadd.xlane.f32.xlu1 %v1484_v25  ;;  %v655_v41 = vmul.f32 1.442695, %v2121_v50  ;;  %v1058_v50 = vld [vmem:[#allocation2 + $0x8] sm:$0xff] }
 0x24a   : > { %v1486_v56 = vpop.eup %1485  ;;  %v719_v33 = vmul.f32 1.442695, %v704_v10 }
 0x24b   : > { %v497_v12 = vpop.permute.xlu1 %496 }
 0x24c   : > { %1491 = vpow2.f32 %v719_v33  ;;  %743 = vadd.xlane.f32.xlu1 %v1486_v56  ;;  %vm523_vm1 = vcmp.eq.s32.totalorder %v497_v12, %v1327_v18 }
 0x24d   : > { %vm593_vm7 = vmand %vm1738_vm9, %vm523_vm1  ;;  %vm528_vm1 = vcmp.eq.s32.totalorder %v512_v61, %v1327_v18  ;;  %1493 = vpow2.f32 %v643_v52  ;;  %v1097_v52 = vld [vmem:[%s2001_s25] sm:$0xff] }
 0x24e   : > { %v1488_v44 = vpop.eup %1487  ;;  %v786_v5 = vsel %vm593_vm7, %v1725_v59, 0.0  ;;  %vm596_vm9 = vmand %vm1747_vm10, %vm526_vm13  ;;  %vm530_vm7 = vcmp.eq.s32.totalorder %v518_v48, %v1327_v18 }
 0x24f   : > { %741 = vadd.xlane.f32.xlu0 %v1488_v44  ;;  %v503_v47 = vpop.permute.xlu1 %502  ;;  %v789_v59 = vsel %vm596_vm9, %v1751_v3, 0.0 }
 0x250   : > { %vm525_vm8 = vcmp.eq.s32.totalorder %v503_v47, %v1327_v18 }
 0x251   : > { %vm595_vm14 = vmand %vm1759_vm12, %vm525_vm8 }
 0x252   : > { %v1490_v60 = vpop.eup %1489  ;;  %v788_v62 = vsel %vm595_vm14, %v1754_v6, 0.0  ;;  %vm598_vm12 = vmand %vm1710_vm5, %vm528_vm1  ;;  %v651_v6 = vmul.f32 1.442695, %v638_v31  ;;  %vm2120_vm5 = vcmask 7168  }
 0x253   : > { %749 = vadd.xlane.f32.xlu0 %v1490_v60  ;;  %v509_v19 = vpop.permute.xlu1 %508  ;;  %v791_v53 = vsel %vm598_vm12, %v1717_v55, 0.0  ;;  %v2115_v55 = vsub.f32 %v1873_v36, %v1889_v49  ;;  %v726_v49 = vld [vmem:[#allocation3 + $0x28] sm:$0xff] }
 0x254   : > { %vm527_vm0 = vcmp.eq.s32.totalorder %v509_v19, %v1327_v18  ;;  %1495 = vpow2.f32 %v651_v6 }
 0x255   : > { %vm597_vm4 = vmand %vm1779_vm15, %vm527_vm0 }
 0x256   : > { %v1492_v4 = vpop.eup %1491  ;;  %v790_v7 = vsel %vm597_vm4, %v1764_v8, 0.0  ;;  %vm600_vm0 = vmand %vm1799_vm3, %vm530_vm7  ;;  %v649_v8 = vmul.f32 1.442695, %v2115_v55 }
 0x257   : > { %751 = vadd.xlane.f32.xlu1 %v1492_v4  ;;  %794 = vadd.xlane.f32.xlu0 %v786_v5  ;;  %v515_v9 = vpop.permute.xlu1 %514  ;;  %v793_v3 = vsel %vm600_vm0, %v1789_v13, 0.0  ;;  %v2117_v13 = vsub.f32 %v1850_v29, %v1865_v35  ;;  %v1494_v16 = vpop.eup %1493  ;;  %vm2122_vm15 = vmmov %vm2120_vm5  ;;  %v727_v5 = vld [vmem:[#allocation3 + $0x30] sm:$0xff]  ;;  %vm1163_vm0 = vcmp.lt.s32.totalorder %v1697_v43, 8 }
 0x258   : > { %vm529_vm6 = vcmp.eq.s32.totalorder %v515_v9, %v1327_v18  ;;  %1497 = vpow2.f32 %v649_v8  ;;  %v730_v27 = vmul.f32 %v1494_v16, %v722_v22  ;;  %v780_v22 = vld [vmem:[#allocation4 + $0x10] sm:$0xff] }
 0x259   : > { %vm599_vm10 = vmand %vm1794_vm2, %vm529_vm6  ;;  %v647_v15 = vmul.f32 1.442695, %v2117_v13 }
 0x25a   : > { %v792_v1 = vsel %vm599_vm10, %v1791_v14, 0.0  ;;  %v641_v14 = vmul.f32 1.442695, %v2116_v11  ;;  %vm2123_vm2 = vmmov %vm2120_vm5 }
 0x25b   : > { %796 = vadd.xlane.f32.xlu1 %v787_v0  ;;  %798 = vadd.xlane.f32.xlu0 %v788_v62  ;;  %vm2124_vm3 = vmmov %vm2123_vm2 }
 0x25c   : > { %1499 = vpow2.f32 %v641_v14  ;;  %vm2125_vm8 = vmmov %vm2123_vm2 }
 0x25d   : > { %1501 = vpow2.f32 %v647_v15  ;;  %vm2126_vm11 = vmmov %vm2123_vm2 }
 0x25e   : > { %v1496_v31 = vpop.eup %1495  ;;  %1503 = vpow2.f32 %v645_v26  ;;  %vm2127_vm13 = vmmov %vm2123_vm2  ;;  %v1098_v26 = vld [vmem:[%s2001_s25 + $0x8] sm:$0xff] }
 0x25f   : > { %800 = vadd.xlane.f32.xlu1 %v789_v59  ;;  %802 = vadd.xlane.f32.xlu0 %v790_v7  ;;  %v734_v35 = vmul.f32 %v1496_v31, %v726_v49  ;;  %1505 = vpow2.f32 %v653_v34  ;;  %vm2128_vm14 = vmmov %vm2123_vm2  ;;  %v2015_v34 = vld [vmem:[%s2001_s25 + $0x20] sm:$0xff] }
 0x260   : > { %1507 = vpow2.f32 %v655_v41  ;;  %vm2129_vm9 = vmmov %vm2123_vm2 }
 0x261   : > { %vm2130_vm1 = vmmov %vm2123_vm2 }
 0x262   : > { %v1498_v29 = vpop.eup %1497  ;;  %vm2131_vm4 = vmmov %vm2130_vm1 }
 0x263   : > { %804 = vadd.xlane.f32.xlu1 %v791_v53  ;;  %806 = vadd.xlane.f32.xlu0 %v792_v1  ;;  %v733_v32 = vmul.f32 %v1498_v29, %v725_v24  ;;  %v728_v53 = vld [vmem:[#allocation3 + $0x38] sm:$0xff]  ;;  %vm2132_vm6 = vmmov %vm2130_vm1 }
 0x264   : > { %vm2133_vm12 = vmmov %vm2130_vm1 }
 0x265   : > { %vm2134_vm10 = vmmov %vm2130_vm1 }
 0x266   : > { %v1500_v17 = vpop.eup %1499  ;;  %vm2135_vm7 = vmmov %vm2130_vm1 }
 0x267   : > { %808 = vadd.xlane.f32.xlu1 %v793_v3  ;;  %v729_v51 = vmul.f32 %v1500_v17, %v721_v37  ;;  %v1502_v20 = vpop.eup %1501  ;;  %v778_v3 = vld [vmem:[#allocation4] sm:$0xff]  ;;  %v781_v37 = vld [vmem:[#allocation4 + $0x18] sm:$0xff] }
 0x268   : > { %v1504_v44 = vpop.eup %1503  ;;  %v732_v54 = vmul.f32 %v1502_v20, %v724_v42  ;;  %v2025_v42 = vld [vmem:[%s2001_s25 + $0x30] sm:$0xff] }
 0x269   : > { %v731_v60 = vmul.f32 %v1504_v44, %v723_v21  ;;  %v1506_v19 = vpop.eup %1505 }
 0x26a   : > { %v735_v62 = vmul.f32 %v1506_v19, %v727_v5  ;;  %v1508_v48 = vpop.eup %1507  ;;  %v1061_v19 = vld [vmem:[#allocation2 + $0x20] sm:$0xff] }
 0x26b   : > { %v736_v55 = vmul.f32 %v1508_v48, %v728_v53 }
 0x2cc   : > { %v740_v30 = vpop.xlane.xlu0 %739 }
 0x2cd   : > { %v754_v36 = vadd.f32 %v740_v30, %v730_v27  ;;  %v2007_v27 = vld [vmem:[%s2001_s25 + $0x18] sm:$0xff] }
 0x2cf   : > { %763 = vst.msk [vmem:[#allocation3 + $0x8] sm:$0xff] %vm2120_vm5, %v754_v36  ;;  %vm1164_vm5 = vcmp.lt.s32.totalorder %v1692_v38, 8  ;;  %v1064_v38 = vld [vmem:[#allocation2 + $0x38] sm:$0xff] }
 0x2d0   : > { %v748_v39 = vpop.xlane.xlu1 %747 }
 0x2d1   : > { %v758_v25 = vadd.f32 %v748_v39, %v734_v35  ;;  %v782_v39 = vld [vmem:[#allocation4 + $0x20] sm:$0xff] }
 0x2d3   : > { %767 = vst.msk [vmem:[#allocation3 + $0x28] sm:$0xff] %vm2122_vm15, %v758_v25  ;;  %v1057_v25 = vld [vmem:[#allocation2] sm:$0xff]  ;;  %vm2136_vm15 = vmmov %vm2130_vm1 }
 0x2d4   : > { %v746_v10 = vpop.xlane.xlu0 %745 }
 0x2d5   : > { %v757_v56 = vadd.f32 %v746_v10, %v733_v32  ;;  %v738_v33 = vpop.xlane.xlu1 %737 }
 0x2d6   : > { %v753_v12 = vadd.f32 %v738_v33, %v729_v51  ;;  %v1066_v18 = vld [vmem:[#allocation3 + $0x8] sm:$0xff] }
 0x2d7   : > { %766 = vst.msk [vmem:[#allocation3 + $0x20] sm:$0xff] %vm2123_vm2, %v757_v56  ;;  %1509 = vlog2.f32 %v1066_v18  ;;  %v2022_v33 = vld [vmem:[%s2001_s25 + $0x28] sm:$0xff]  ;;  %vm1167_vm2 = vcmp.lt.s32.totalorder %v1719_v57, 8 }
 0x2d8   : > { %762 = vst.msk [vmem:[#allocation3] sm:$0xff] %vm2124_vm3, %v753_v12  ;;  %vm2137_vm3 = vmmov %vm2130_vm1 }
 0x2d9   : > { %v744_v47 = vpop.xlane.xlu1 %743 }
 0x2da   : > { %v756_v2 = vadd.f32 %v744_v47, %v732_v54  ;;  %v1070_v59 = vld [vmem:[#allocation3 + $0x28] sm:$0xff]  ;;  %v784_v54 = vld [vmem:[#allocation4 + $0x30] sm:$0xff] }
 0x2dc   : > { %765 = vst.msk [vmem:[#allocation3 + $0x18] sm:$0xff] %vm2125_vm8, %v756_v2  ;;  %v742_v4 = vpop.xlane.xlu0 %741  ;;  %vm1166_vm8 = vcmp.lt.s32.totalorder %v1700_v45, 8 }
 0x2dd   : > { %v755_v61 = vadd.f32 %v742_v4, %v731_v60  ;;  %v783_v60 = vld [vmem:[#allocation4 + $0x28] sm:$0xff] }
 0x2de   : > { %v1069_v9 = vld [vmem:[#allocation3 + $0x20] sm:$0xff] }
 0x2df   : > { %1511 = vlog2.f32 %v1069_v9  ;;  %v1065_v0 = vld [vmem:[#allocation3] sm:$0xff]  ;;  %764 = vst.msk [vmem:[#allocation3 + $0x10] sm:$0xff] %vm2126_vm11, %v755_v61  ;;  %v2032_v9 = vld [vmem:[%s2001_s25 + $0x38] sm:$0xff]  ;;  %vm2138_vm11 = vmmov %vm2130_vm1 }
 0x2e0   : > { %1513 = vlog2.f32 %v1065_v0  ;;  %v750_v7 = vpop.xlane.xlu0 %749  ;;  %v1060_v0 = vld [vmem:[#allocation2 + $0x18] sm:$0xff] }
 0x2e1   : > { %v759_v1 = vadd.f32 %v750_v7, %v735_v62  ;;  %1515 = vlog2.f32 %v1070_v59  ;;  %v1510_v14 = vpop.eup %1509 }
 0x2e2   : > { %v1076_v30 = vmul.f32 0.6931472, %v1510_v14 }
 0x2e3   : > { %v1068_v6 = vld [vmem:[#allocation3 + $0x18] sm:$0xff]  ;;  %768 = vst.msk [vmem:[#allocation3 + $0x30] sm:$0xff] %vm2127_vm13, %v759_v1  ;;  %vm1165_vm13 = vcmp.lt.s32.totalorder %v1702_v46, 8 }
 0x2e4   : > { %1517 = vlog2.f32 %v1068_v6  ;;  %v795_v8 = vpop.xlane.xlu0 %794  ;;  %v752_v11 = vpop.xlane.xlu1 %751  ;;  %v1090_v10 = vadd.f32 %v1076_v30, %v1058_v50 }
 0x2e5   : > { %v810_v13 = vadd.f32 %v795_v8, %v778_v3  ;;  %v760_v15 = vadd.f32 %v752_v11, %v736_v55  ;;  %1519 = vrcp.f32 %v1097_v52 }
 0x2e6   : > { %v1067_v16 = vld [vmem:[#allocation3 + $0x10] sm:$0xff]  ;;  %v1114_v48 = vmul.f32 %v1098_v26, %v1090_v10 }
 0x2e7   : > { %1521 = vlog2.f32 %v1067_v16  ;;  %818 = vst.msk [vmem:[#allocation4] sm:$0xff] %vm2128_vm14, %v810_v13  ;;  %v785_v13 = vld [vmem:[#allocation4 + $0x38] sm:$0xff]  ;;  %v1059_v16 = vld [vmem:[#allocation2 + $0x10] sm:$0xff]  ;;  %vm1168_vm14 = vcmp.lt.s32.totalorder %v1694_v40, 8 }
 0x2e8   : > { %769 = vst.msk [vmem:[#allocation3 + $0x38] sm:$0xff] %vm2129_vm9, %v760_v15  ;;  %1523 = vrcp.f32 %v1098_v26  ;;  %v799_v31 = vpop.xlane.xlu0 %798  ;;  %v797_v36 = vpop.xlane.xlu1 %796  ;;  %v1062_v15 = vld [vmem:[#allocation2 + $0x28] sm:$0xff]  ;;  %v1063_v10 = vld [vmem:[#allocation2 + $0x30] sm:$0xff]  ;;  %vm2139_vm9 = vmmov %vm2130_vm1 }
 0x2e9   : > { %v1512_v49 = vpop.eup %1511  ;;  %v812_v29 = vadd.f32 %v799_v31, %v780_v22  ;;  %v811_v35 = vadd.f32 %v797_v36, %v779_v23  ;;  %1525 = vrcp.f32 %v2007_v27 }
 0x2ea   : > { %v1514_v24 = vpop.eup %1513  ;;  %v1071_v17 = vld [vmem:[#allocation3 + $0x30] sm:$0xff]  ;;  %v1082_v32 = vmul.f32 0.6931472, %v1512_v49 }
 0x2eb   : > { %v1074_v41 = vmul.f32 0.6931472, %v1514_v24  ;;  %1527 = vlog2.f32 %v1071_v17  ;;  %820 = vst.msk [vmem:[#allocation4 + $0x10] sm:$0xff] %vm2130_vm1, %v812_v29  ;;  %v1516_v56 = vpop.eup %1515 }
 0x2ec   : > { %819 = vst.msk [vmem:[#allocation4 + $0x8] sm:$0xff] %vm2131_vm4, %v811_v35  ;;  %1529 = vrcp.f32 %v2015_v34  ;;  %v803_v51 = vpop.xlane.xlu0 %802  ;;  %v801_v20 = vpop.xlane.xlu1 %800  ;;  %v1084_v62 = vmul.f32 0.6931472, %v1516_v56  ;;  %v1093_v59 = vadd.f32 %v1082_v32, %v1061_v19  ;;  %vm1169_vm4 = vcmp.lt.s32.totalorder %v1723_v58, 8 }
 0x2ed   : > { %1531 = vrcp.f32 %v2012_v28  ;;  %v1089_v12 = vadd.f32 %v1074_v41, %v1057_v25  ;;  %v814_v44 = vadd.f32 %v803_v51, %v782_v39  ;;  %v813_v18 = vadd.f32 %v801_v20, %v781_v37 }
 0x2ee   : > { %v1518_v21 = vpop.eup %1517  ;;  %1533 = vrcp.f32 %v2022_v33  ;;  %v1105_v47 = vld [vmem:[#allocation4] sm:$0xff]  ;;  %v1117_v31 = vmul.f32 %v2015_v34, %v1093_v59  ;;  %v1094_v36 = vadd.f32 %v1084_v62, %v1062_v15 }
 0x2ef   : > { %v1072_v2 = vld [vmem:[#allocation3 + $0x38] sm:$0xff]  ;;  %v1080_v4 = vmul.f32 0.6931472, %v1518_v21  ;;  %v1113_v5 = vmul.f32 %v1097_v52, %v1089_v12  ;;  %822 = vst.msk [vmem:[#allocation4 + $0x20] sm:$0xff] %vm2132_vm6, %v814_v44  ;;  %v1520_v61 = vpop.eup %1519  ;;  %vm2140_vm6 = vmmov %vm2130_vm1 }
 0x2f0   : > { %1535 = vlog2.f32 %v1072_v2  ;;  %821 = vst.msk [vmem:[#allocation4 + $0x18] sm:$0xff] %vm2133_vm12, %v813_v18  ;;  %v807_v7 = vpop.xlane.xlu0 %806  ;;  %v805_v53 = vpop.xlane.xlu1 %804  ;;  %v1118_v2 = vmul.f32 %v2022_v33, %v1094_v36  ;;  %vm2141_vm12 = vmmov %vm2130_vm1 }
 0x2f1   : > { %1537 = vrcp.f32 %v2025_v42  ;;  %v1522_v1 = vpop.eup %1521  ;;  %v1121_v3 = vsub.f32 %v1105_v47, %v1113_v5  ;;  %v1092_v6 = vadd.f32 %v1080_v4, %v1060_v0  ;;  %v816_v52 = vadd.f32 %v807_v7, %v784_v54 }
 0x2f2   : > { %v815_v55 = vadd.f32 %v805_v53, %v783_v60  ;;  %v1524_v8 = vpop.eup %1523  ;;  %v1078_v11 = vmul.f32 0.6931472, %v1522_v1  ;;  %1539 = vrcp.f32 %v2032_v9  ;;  %v1107_v20 = vld [vmem:[#allocation4 + $0x10] sm:$0xff] }
 0x2f3   : > { %v1106_v14 = vld [vmem:[#allocation4 + $0x8] sm:$0xff]  ;;  %v1130_v22 = vmul.f32 %v1520_v61, %v1121_v3  ;;  %824 = vst.msk [vmem:[#allocation4 + $0x30] sm:$0xff] %vm2134_vm10, %v816_v52  ;;  %v1526_v26 = vpop.eup %1525  ;;  %v1116_v17 = vmul.f32 %v2007_v27, %v1092_v6  ;;  %vm1170_vm10 = vcmp.lt.s32.totalorder %v1742_v63, 8 }
 0x2f4   : > { %v1122_v23 = vsub.f32 %v1106_v14, %v1114_v48  ;;  %823 = vst.msk [vmem:[#allocation4 + $0x28] sm:$0xff] %vm2135_vm7, %v815_v55  ;;  %v1091_v30 = vadd.f32 %v1078_v11, %v1059_v16  ;;  %v809_v49 = vpop.xlane.xlu1 %808  ;;  %vm2142_vm7 = vmmov %vm2130_vm1 }
 0x2f5   : > { %v1528_v29 = vpop.eup %1527  ;;  %v1171_v35 = vmul.f32 -1.0, %v1130_v22  ;;  %v817_v39 = vadd.f32 %v809_v49, %v785_v13 }
 0x2f6   : > { %v1132_v24 = vmul.f32 %v1524_v8, %v1122_v23  ;;  %v1530_v37 = vpop.eup %1529  ;;  %v1086_v50 = vmul.f32 0.6931472, %v1528_v29  ;;  %v1115_v34 = vmul.f32 %v2012_v28, %v1091_v30  ;;  %v1109_v41 = vld [vmem:[#allocation4 + $0x20] sm:$0xff] }
 0x2f7   : > { %v1108_v25 = vld [vmem:[#allocation4 + $0x18] sm:$0xff]  ;;  %v1532_v32 = vpop.eup %1531  ;;  %v1179_v51 = vsel %vm1163_vm0, %v1171_v35, 0.0  ;;  %v1125_v12 = vsub.f32 %v1109_v41, %v1117_v31  ;;  %825 = vst.msk [vmem:[#allocation4 + $0x38] sm:$0xff] %vm2136_vm15, %v817_v39  ;;  %vm2143_vm0 = vmmov %vm2130_vm1 }
 0x2f8   : > { %v1172_v56 = vmul.f32 -1.0, %v1132_v24  ;;  %v1124_v44 = vsub.f32 %v1108_v25, %v1116_v17  ;;  %v1534_v27 = vpop.eup %1533  ;;  %1188 = vst.msk [vmem:[%s2044_s28] sm:$0xff] %vm2137_vm3, %v1179_v51  ;;  %v1123_v28 = vsub.f32 %v1107_v20, %v1115_v34  ;;  %v1095_v18 = vadd.f32 %v1086_v50, %v1063_v10 }
 0x2f9   : > { %v1138_v43 = vmul.f32 %v1530_v37, %v1125_v12 }
 0x2fa   : > { %v1536_v54 = vpop.eup %1535  ;;  %v1180_v21 = vsel %vm1164_vm5, %v1172_v56, 0.0  ;;  %v1136_v47 = vmul.f32 %v1526_v26, %v1124_v44  ;;  %v1134_v4 = vmul.f32 %v1532_v32, %v1123_v28  ;;  %v1119_v5 = vmul.f32 %v2025_v42, %v1095_v18  ;;  %v1111_v61 = vld [vmem:[#allocation4 + $0x30] sm:$0xff] }
 0x2fb   : > { %v1538_v60 = vpop.eup %1537  ;;  %v1088_v19 = vmul.f32 0.6931472, %v1536_v54  ;;  %1189 = vst.msk [vmem:[%s2044_s28 + $0x8] sm:$0xff] %vm2138_vm11, %v1180_v21  ;;  %v1110_v0 = vld [vmem:[#allocation4 + $0x28] sm:$0xff]  ;;  %v1175_v62 = vmul.f32 -1.0, %v1138_v43 }
 0x2fc   : > { %v1174_v48 = vmul.f32 -1.0, %v1136_v47  ;;  %v1126_v59 = vsub.f32 %v1110_v0, %v1118_v2  ;;  %v1173_v33 = vmul.f32 -1.0, %v1134_v4  ;;  %v1127_v7 = vsub.f32 %v1111_v61, %v1119_v5  ;;  %v1540_v1 = vpop.eup %1539 }
 0x2fd   : > { %v1096_v53 = vadd.f32 %v1088_v19, %v1064_v38  ;;  %v1183_v3 = vsel %vm1167_vm2, %v1175_v62, 0.0 }
 0x2fe   : > { %v1182_v42 = vsel %vm1166_vm8, %v1174_v48, 0.0  ;;  %v1140_v6 = vmul.f32 %v1534_v27, %v1126_v59  ;;  %v1181_v46 = vsel %vm1165_vm13, %v1173_v33, 0.0  ;;  %1192 = vst.msk [vmem:[%s2044_s28 + $0x20] sm:$0xff] %vm2139_vm9, %v1183_v3  ;;  %v1142_v52 = vmul.f32 %v1538_v60, %v1127_v7  ;;  %v1112_v8 = vld [vmem:[#allocation4 + $0x38] sm:$0xff] }
 0x2ff   : > { %1191 = vst.msk [vmem:[%s2044_s28 + $0x18] sm:$0xff] %vm2130_vm1, %v1182_v42  ;;  %v1120_v55 = vmul.f32 %v2032_v9, %v1096_v53 }
 0x300   : > { %1190 = vst.msk [vmem:[%s2044_s28 + $0x10] sm:$0xff] %vm2140_vm6, %v1181_v46  ;;  %v1176_v45 = vmul.f32 -1.0, %v1140_v6  ;;  %v1177_v57 = vmul.f32 -1.0, %v1142_v52 }
 0x301   : > { %v1128_v11 = vsub.f32 %v1112_v8, %v1120_v55 }
 0x302   : > { %v1184_v14 = vsel %vm1168_vm14, %v1176_v45, 0.0  ;;  %v1185_v40 = vsel %vm1169_vm4, %v1177_v57, 0.0 }
 0x303   : > { %1193 = vst.msk [vmem:[%s2044_s28 + $0x28] sm:$0xff] %vm2141_vm12, %v1184_v14  ;;  %v1144_v13 = vmul.f32 %v1540_v1, %v1128_v11 }
 0x304   : > { %1194 = vst.msk [vmem:[%s2044_s28 + $0x30] sm:$0xff] %vm2142_vm7, %v1185_v40 }
 0x305   : > { %v1178_v15 = vmul.f32 -1.0, %v1144_v13 }
 0x307   : > { %v1186_v16 = vsel %vm1170_vm10, %v1178_v15, 0.0 }
 0x308   : > { %1195 = vst.msk [vmem:[%s2044_s28 + $0x38] sm:$0xff] %vm2143_vm0, %v1186_v16 }
 0x309 PF: > { %s15_s20 = sadd.s32 1, %s1563_s20   ;;  %s2144_s18 = smov %s1559_s19 }
 0x30a   : > { %p12_p5 = scmp.ge.s32.totalorder %s15_s20, 4   ;;  %s2145_s19 = smov %s2147_s21 }
 0x30c   :  { %14 = sbr.rel (!%p12_p5) target bundleno = 2 (0x2), region = 98 }

</bundles_post_ra>
